<compile_context>
chip_gen: v5e
topology: v5e:2x2
jax: 0.10.0
libtpu: 0.0.40
codegen_flags: <defaults>
</compile_context>

<pallas_src>
import functools

import jax
import jax.numpy as jnp
from jax.experimental import pallas as pl
from jax.experimental.pallas import tpu as pltpu


def _round_up(x, m):
    return ((x + m - 1) // m) * m


def _cdiv(a, b):
    return -(-a // b)


def _frn_kernel(x_ref, params_ref, o_ref, *, eps, inv_hw):
    """Normalize one block of (batch, channel) rows over the spatial (lane) axis."""
    x = x_ref[...].astype(jnp.float32)                      # (block_rows, hw)
    # True mean of x^2 over the spatial axis (inv_hw = 1 / (H*W)).
    nu2 = jnp.sum(x * x, axis=-1, keepdims=True) * inv_hw   # (block_rows, 1)

    p = params_ref[...]                                     # (block_rows, 3) f32
    gamma = p[:, 0:1]
    beta = p[:, 1:2]
    tau = p[:, 2:3]

    # Fold gamma into the per-row scale: one fewer full-tile VALU pass, one
    # fewer f32 temporary.  rsqrt goes to the EUP slot (essentially free here).
    scale = gamma * jax.lax.rsqrt(nu2 + eps)                # (block_rows, 1)
    o_ref[...] = jnp.maximum(x * scale + beta, tau).astype(o_ref.dtype)


def _vmem_capacity_bytes():
    """Best-effort query of per-core VMEM capacity; defaults to 128 MiB."""
    try:
        info = pltpu.get_tpu_info()
        cap = getattr(info, "vmem_capacity_bytes", None)
        if cap:
            return int(cap)
    except Exception:
        pass
    return 128 * 1024 * 1024


def _choose_block_rows(rows, hw, itemsize, vmem_cap):
    """Pick a row-block size: big enough to be HBM-bandwidth bound, small enough
    for the generation's VMEM, and giving enough grid steps for 2-TC parts."""
    row_align = max(8, 32 // itemsize)          # sublane packing (8 f32 / 16 bf16)
    if vmem_cap <= 64 * 1024 * 1024:
        # v7x-class: 64 MiB VMEM per TensorCore -> keep x blocks at ~2 MiB.
        x_block_budget = 2 * 1024 * 1024
        max_block_rows = 1024
    else:
        # v5e / v6e: 128 MiB VMEM -> larger blocks, fewer / longer DMAs.
        x_block_budget = 6 * 1024 * 1024
        max_block_rows = 2048

    block_rows = max(1, x_block_budget // (hw * itemsize))
    block_rows = min(block_rows, max_block_rows)
    # Prefer >= 8 grid steps when the data is large enough, so both v7x
    # TensorCores get balanced work (per-step overhead ~0.35 us is negligible).
    if rows >= 8 * row_align:
        block_rows = min(block_rows, _round_up(_cdiv(rows, 8), row_align))
    block_rows = max(row_align, (block_rows // row_align) * row_align)
    if block_rows >= rows:
        block_rows = rows   # single full-extent block (exempt from the 8-row rule)
    return block_rows


def frn_forward(x, gamma, beta, tau, eps=1e-5, *, block_rows=None):
    """x: (N, C, H, W); gamma/beta/tau: (1, C, 1, 1). Returns (N, C, H, W)."""
    N, C, H, W = x.shape
    rows, hw = N * C, H * W
    itemsize = jnp.dtype(x.dtype).itemsize

    vmem_cap = _vmem_capacity_bytes()
    if block_rows is None:
        block_rows = _choose_block_rows(rows, hw, itemsize, vmem_cap)
    block_rows = min(block_rows, rows)
    grid = (_cdiv(rows, block_rows),)

    # No padding, no extra copies: free reshape to (rows, hw).
    x2d = x.reshape(rows, hw)

    # Tiny per-row (rows, 3) f32 table of (gamma, beta, tau); built once, each
    # grid step only DMAs its own (block_rows, 3) slice.
    def _per_row(p):
        return jnp.broadcast_to(jnp.reshape(p, (1, C)), (N, C)).reshape(rows)

    params = jnp.stack(
        [_per_row(gamma), _per_row(beta), _per_row(tau)], axis=-1
    ).astype(jnp.float32)                                    # (rows, 3)

    # Last dims are full extents (hw and 3) -> exempt from the 128-lane rule.
    x_spec = pl.BlockSpec((block_rows, hw), lambda i: (i, 0))
    params_spec = pl.BlockSpec((block_rows, 3), lambda i: (i, 0))

    vmem_limit = min(64 * 1024 * 1024, (vmem_cap * 3) // 4)   # 48 MiB on v7x, 64 MiB on v5e/v6e

    out2d = pl.pallas_call(
        functools.partial(_frn_kernel, eps=float(eps), inv_hw=1.0 / float(hw)),
        out_shape=jax.ShapeDtypeStruct((rows, hw), x.dtype),
        grid_spec=pltpu.PrefetchScalarGridSpec(
            num_scalar_prefetch=0,
            grid=grid,
            in_specs=[x_spec, params_spec],
            out_specs=x_spec,
        ),
        compiler_params=pltpu.CompilerParams(
            dimension_semantics=("parallel",),
            vmem_limit_bytes=vmem_limit,
        ),
    )(x2d, params)

    return out2d.reshape(N, C, H, W)


def frn_reference(x, gamma, beta, tau, eps=1e-5):
    nu2 = jnp.mean(x * x, axis=(2, 3), keepdims=True)
    xn = x * jax.lax.rsqrt(nu2 + eps)
    return jnp.maximum(gamma * xn + beta, tau)


if __name__ == "__main__":
    key = jax.random.PRNGKey(0)
    kx, kg, kb, kt = jax.random.split(key, 4)

    # Case 1: the module's natural small shape (N*C = 8 rows, H*W = 256 lanes).
    N, C, H, W = 2, 4, 16, 16
    x = jax.random.normal(kx, (N, C, H, W), dtype=jnp.float32)
    gamma = 1.0 + 0.1 * jax.random.normal(kg, (1, C, 1, 1), dtype=jnp.float32)
    beta = 0.1 * jax.random.normal(kb, (1, C, 1, 1), dtype=jnp.float32)
    tau = 0.1 * jax.random.normal(kt, (1, C, 1, 1), dtype=jnp.float32)

    out = jax.block_until_ready(frn_forward(x, gamma, beta, tau))
    ref = frn_reference(x, gamma, beta, tau)
    assert out.shape == (N, C, H, W)
    assert jnp.allclose(out, ref, atol=1e-5, rtol=1e-5), "mismatch vs reference (case 1)"

    # Case 2: non-128-aligned spatial (7x7 = 49) and odd N*C (10) -> single
    # full-extent block, no padding anywhere.
    N2, C2, H2, W2 = 2, 5, 7, 7
    k1, k2, k3, k4 = jax.random.split(jax.random.PRNGKey(1), 4)
    x2 = jax.random.normal(k1, (N2, C2, H2, W2), dtype=jnp.float32)
    g2 = 1.0 + 0.1 * jax.random.normal(k2, (1, C2, 1, 1), dtype=jnp.float32)
    b2 = 0.1 * jax.random.normal(k3, (1, C2, 1, 1), dtype=jnp.float32)
    t2 = 0.1 * jax.random.normal(k4, (1, C2, 1, 1), dtype=jnp.float32)

    out2 = jax.block_until_ready(frn_forward(x2, g2, b2, t2))
    ref2 = frn_reference(x2, g2, b2, t2)
    assert out2.shape == (N2, C2, H2, W2)
    assert jnp.allclose(out2, ref2, atol=1e-5, rtol=1e-5), "mismatch vs reference (case 2)"

    # Case 3: forced multi-step grid with a ragged last row-block (rows = 12,
    # block_rows = 8 -> grid of 2, last block half out-of-bounds) to exercise
    # Pallas' masked write-back of the partial block.
    N3, C3, H3, W3 = 3, 4, 8, 8
    j1, j2, j3, j4 = jax.random.split(jax.random.PRNGKey(2), 4)
    x3 = jax.random.normal(j1, (N3, C3, H3, W3), dtype=jnp.float32)
    g3 = 1.0 + 0.1 * jax.random.normal(j2, (1, C3, 1, 1), dtype=jnp.float32)
    b3 = 0.1 * jax.random.normal(j3, (1, C3, 1, 1), dtype=jnp.float32)
    t3 = 0.1 * jax.random.normal(j4, (1, C3, 1, 1), dtype=jnp.float32)

    out3 = jax.block_until_ready(frn_forward(x3, g3, b3, t3, block_rows=8))
    ref3 = frn_reference(x3, g3, b3, t3)
    assert out3.shape == (N3, C3, H3, W3)
    assert jnp.allclose(out3, ref3, atol=1e-5, rtol=1e-5), "mismatch vs reference (case 3)"

    print("KERNEL_OK")
</pallas_src>

<mosaic_0001>
module attributes {stable_mosaic.version = 11 : i64} {
  func.func @_frn_kernel(%arg0: i32, %arg1: memref<8x256xf32, #tpu.memory_space<vmem>>, %arg2: memref<8x3xf32, #tpu.memory_space<vmem>>, %arg3: memref<8x256xf32, #tpu.memory_space<vmem>>) attributes {dimension_semantics = [#tpu.dimension_semantics<parallel>], iteration_bounds = array<i64: 1>, scalar_prefetch = 0 : i64, scratch_operands = 0 : i64, tpu.core_type = #tpu.core_type<tc>, window_params = [{transform_indices = @transform_0, window_bounds = array<i64: 8, 256>}, {transform_indices = @transform_1, window_bounds = array<i64: 8, 3>}, {transform_indices = @transform_2, window_bounds = array<i64: 8, 256>}]} {
    %c0 = arith.constant 0 : index
    %c0_0 = arith.constant 0 : index
    %0 = vector.load %arg1[%c0, %c0_0] : memref<8x256xf32, #tpu.memory_space<vmem>>, vector<8x256xf32>
    %1 = arith.mulf %0, %0 : vector<8x256xf32>
    %cst = arith.constant dense<0.000000e+00> : vector<8xf32>
    %2 = vector.multi_reduction <add>, %1, %cst [1] : vector<8x256xf32> to vector<8xf32>
    %3 = vector.shape_cast %2 : vector<8xf32> to vector<8x1xf32>
    %cst_1 = arith.constant 3.906250e-03 : f32
    %4 = vector.broadcast %cst_1 : f32 to vector<8x1xf32>
    %5 = arith.mulf %3, %4 : vector<8x1xf32>
    %c0_2 = arith.constant 0 : index
    %c0_3 = arith.constant 0 : index
    %6 = vector.load %arg2[%c0_2, %c0_3] : memref<8x3xf32, #tpu.memory_space<vmem>>, vector<8x3xf32>
    %7 = vector.extract_strided_slice %6 {offsets = [0, 0], sizes = [8, 1], strides = [1, 1]} : vector<8x3xf32> to vector<8x1xf32>
    %8 = vector.extract_strided_slice %6 {offsets = [0, 1], sizes = [8, 1], strides = [1, 1]} : vector<8x3xf32> to vector<8x1xf32>
    %9 = vector.extract_strided_slice %6 {offsets = [0, 2], sizes = [8, 1], strides = [1, 1]} : vector<8x3xf32> to vector<8x1xf32>
    %cst_4 = arith.constant 9.99999974E-6 : f32
    %10 = vector.broadcast %cst_4 : f32 to vector<8x1xf32>
    %11 = arith.addf %5, %10 : vector<8x1xf32>
    %12 = math.rsqrt %11 : vector<8x1xf32>
    %13 = arith.mulf %7, %12 : vector<8x1xf32>
    %14 = vector.broadcast %13 : vector<8x1xf32> to vector<8x256xf32>
    %15 = arith.mulf %0, %14 : vector<8x256xf32>
    %16 = vector.broadcast %8 : vector<8x1xf32> to vector<8x256xf32>
    %17 = arith.addf %15, %16 : vector<8x256xf32>
    %18 = vector.broadcast %9 : vector<8x1xf32> to vector<8x256xf32>
    %19 = arith.maximumf %17, %18 : vector<8x256xf32>
    %c0_5 = arith.constant 0 : index
    %c0_6 = arith.constant 0 : index
    %20 = vector.load %arg3[%c0_5, %c0_6] : memref<8x256xf32, #tpu.memory_space<vmem>>, vector<8x256xf32>
    tpu.vector_store %arg3[%c0_5, %c0_6], %19 {strides = array<i32>} : memref<8x256xf32, #tpu.memory_space<vmem>>, vector<8x256xf32>,
    return
  }
  func.func @transform_0(%arg0: i32) -> (i32, i32) {
    %c0_i32 = arith.constant 0 : i32
    %c0_i32_0 = arith.constant 0 : i32
    return %arg0, %c0_i32 : i32, i32
  }
  func.func @transform_1(%arg0: i32) -> (i32, i32) {
    %c0_i32 = arith.constant 0 : i32
    %c0_i32_0 = arith.constant 0 : i32
    return %arg0, %c0_i32 : i32, i32
  }
  func.func @transform_2(%arg0: i32) -> (i32, i32) {
    %c0_i32 = arith.constant 0 : i32
    %c0_i32_0 = arith.constant 0 : i32
    return %arg0, %c0_i32 : i32, i32
  }
}

</mosaic_0001>

<bundles_post_ra>
// kernel: tpu_custom_call.1
= control target key start
LH: loop header
LB: loop body
LE: loop exit
PB: predicated region body
PF: predicated region fallthrough
CT: control target
= control target key end

     0   :  { %7 = vsyncpa [#allocation3], 0  ;;  %s178_s0 = inlined_call_operand.hbm [shape: f32[8,256], index: 0, kind: input, shape index: {}]   ;;  %s179_s1 = inlined_call_operand.vmem [shape: f32[8,3], index: 1, kind: input, shape index: {}]   ;;  %s180_s2 = inlined_call_operand.hbm [shape: f32[8,256], index: 2, kind: output, shape index: {}]  }
   0x1   :  { %8 = vsyncpa [#allocation4], 0  ;;  %s14_s11 = sshll.u32 %s178_s0, 4  ;;  %s149_s12 = smov [#allocation2]   ;;  %s15_s11 = int_to_ptr.hbm [resolvable:$true] %s14_s11 }
   0x2   :  { %s16_s13 = sshll.u32 %s149_s12, 4  ;;  %s17_s13 = int_to_ptr.vmem [resolvable:$true] %s16_s13 }
   0x3   :  { %19 = dma.hbm_to_vmem [thread:$0]  %s15_s11, 256, %s17_s13, [#allocation3]  }
   0x4   :  { %145 = dma.done.wait [#allocation3], 256  }
   0x5   :  { %146 = vsyncadd [#allocation3], 4294967040  ;;  %v26_v0 = vld [vmem:[#allocation2] sm:$0xff]  ;;  %v27_v1 = vld [vmem:[#allocation2 + $0x8] sm:$0xff]  ;;  %v150_v6 = vmov 1   ;;  %v151_v7 = vmov 0  }
   0x6   :  { %v28_v2 = vmul.f32 %v26_v0, %v26_v0  ;;  %v29_v3 = vmul.f32 %v27_v1, %v27_v1  ;;  %v34_v5 = vld [vmem:[%s179_s1] sm:$0xff]  ;;  %92 = vset.pattern.permute.xlu1 %v150_v6  ;;  %91 = vset.pattern.permute.xlu0 %v151_v7  ;;  %v152_v8 = vmov 2   ;;  %s153_s0 = smov [#allocation5]   ;;  %s76_s18 = sshll.u32 %s180_s2, 4  ;;  %s77_s18 = int_to_ptr.hbm [resolvable:$true] %s76_s18 }
   0x7   :  { %56 = vperm.xlu1 %92, %v34_v5   ;;  %s74_s1 = sshll.u32 %s153_s0, 4  ;;  %s75_s1 = int_to_ptr.vmem [resolvable:$true] %s74_s1 }
   0x8   :  { %v30_v4 = vadd.f32 %v29_v3, %v28_v2 }
   0xa   :  { %31 = vadd.xlane.f32.xlu0 %v30_v4 }
   0xf   :  { %93 = vset.pattern.permute.xlu1 %v152_v8 }
  0x10   :  { %62 = vperm.xlu1 %93, %v34_v5  }
  0x79   :  { %v57_v20 = vpop.permute.xlu1 %56 }
  0x7d   :  { %v32_v9 = vpop.xlane.xlu0 %31 }
  0x7e   :  { %v33_v10 = vmul.f32 0.00390625, %v32_v9 }
  0x80   :  { %v35_v11 = vadd.f32 1e-05, %v33_v10 }
  0x82   :  { %95 = vrsqrt.f32 %v35_v11  ;;  %vm42_vm1 = vweird.f32 %v35_v11  ;;  %v63_v24 = vpop.permute.xlu1 %62 }
  0x88   :  { %v96_v12 = vpop.eup %95 }
  0x89   :  { %v37_v13 = vmul.f32 %v96_v12, %v35_v11  ;;  %vm43_vm0 = vweird.f32 %v96_v12 }
  0x8a   :  { %vm44_vm2 = vmor %vm42_vm1, %vm43_vm0 }
  0x8b   :  { %v38_v14 = vmul.f32 %v96_v12, %v37_v13 }
  0x8d   :  { %v39_v15 = vmul.f32 0.5, %v38_v14 }
  0x8f   :  { %v40_v16 = vsub.f32 1.5, %v39_v15 }
  0x91   :  { %v41_v17 = vmul.f32 %v96_v12, %v40_v16 }
  0x93   :  { %v45_v18 = vsel %vm44_vm2, %v96_v12, %v41_v17 }
  0x94   :  { %v46_v19 = vmul.f32 %v45_v18, %v34_v5 }
  0x96   :  { %49 = vperm.xlu0 %91, %v46_v19  }
  0x9e   :  { %94 = vset.pattern.permute.xlu0 %v152_v8 }
 0x108   :  { %v50_v21 = vpop.permute.xlu0 %49 }
 0x109   :  { %v52_v22 = vmul.f32 %v50_v21, %v26_v0  ;;  %v53_v23 = vmul.f32 %v50_v21, %v27_v1 }
 0x10b   :  { %v59_v25 = vadd.f32 %v57_v20, %v52_v22  ;;  %v60_v26 = vadd.f32 %v57_v20, %v53_v23 }
 0x10d   :  { %v65_v27 = vmax.f32 %v59_v25, %v63_v24  ;;  %v66_v28 = vmax.f32 %v60_v26, %v63_v24 }
 0x10f   :  { %67 = vst [vmem:[#allocation5] sm:$0xff] %v65_v27 }
 0x110   :  { %68 = vst [vmem:[#allocation5 + $0x8] sm:$0xff] %v66_v28 }
 0x111   :  { %79 = dma.vmem_to_hbm [thread:$0]  %s75_s1, 256, %s77_s18, [#allocation4]  }
 0x112   :  { %147 = dma.done.wait [#allocation4], 256  }
 0x113   :  { %148 = vsyncadd [#allocation4], 4294967040 }
 0x114   :  { %84 = vsyncpa [#allocation3], 1 }
 0x115   :  { %85 = vsyncpa [#allocation4], 1 }

</bundles_post_ra>
